<compile_context>
chip_gen: v7x
topology: tpu7x:2x2x1
jax: 0.10.0
libtpu: 0.0.40
codegen_flags: <defaults>
</compile_context>

<pallas_src>
import functools

import jax
import jax.numpy as jnp
from jax.experimental import pallas as pl
from jax.experimental.pallas import tpu as pltpu


TM_MAX = 1024  # batch tile; fits comfortably in 64 MiB (v7x) and 128 MiB VMEM


def _round_up(x, m):
    return ((x + m - 1) // m) * m


# ----------------------------------------------------------------------------
# Deterministic parameter init (mirrors layer_init: orthogonal weight, 0 bias)
# ----------------------------------------------------------------------------
def orthogonal_init(key, out_features, in_features, gain):
    """torch.nn.init.orthogonal_-style init, deterministic from `key`.

    Returns a weight of shape (out_features, in_features), torch convention.
    """
    rows, cols = out_features, in_features
    transpose = rows < cols
    shape = (cols, rows) if transpose else (rows, cols)
    a = jax.random.normal(key, shape, dtype=jnp.float32)
    q, r = jnp.linalg.qr(a)
    d = jnp.sign(jnp.diagonal(r))
    q = q * d[None, :]
    if transpose:
        q = q.T
    return (gain * q).astype(jnp.float32)


def make_params(key, in_dim, out_dim):
    k1, k2, k3 = jax.random.split(key, 3)
    sqrt2 = jnp.sqrt(2.0)
    # torch-convention weights (out, in), then transpose to (in, out) and cast
    # to bf16 for the kernel (f32 accumulation keeps critic-value precision).
    w1_t = orthogonal_init(k1, 512, in_dim, sqrt2)
    w2_t = orthogonal_init(k2, 256, 512, sqrt2)
    w3_t = orthogonal_init(k3, out_dim, 256, 1.0)
    return dict(
        w1=w1_t.T.astype(jnp.bfloat16), b1=jnp.zeros((1, 512), jnp.float32),
        w2=w2_t.T.astype(jnp.bfloat16), b2=jnp.zeros((1, 256), jnp.float32),
        w3=w3_t.T.astype(jnp.bfloat16), b3=jnp.zeros((1, out_dim), jnp.float32),
    )


# ----------------------------------------------------------------------------
# Pallas kernel: fused 3-layer MLP (one batch tile per grid step)
# ----------------------------------------------------------------------------
def critic_mlp_kernel(x_ref, w1_ref, b1_ref, w2_ref, b2_ref, w3_ref, b3_ref,
                      o_ref):
    # Layer 1: Linear(in_dim, 512) + ReLU   (bf16 MXU, f32 accumulate)
    x = x_ref[...].astype(jnp.bfloat16)
    h1 = jnp.dot(x, w1_ref[...], preferred_element_type=jnp.float32)
    h1 = jnp.maximum(h1 + b1_ref[...], 0.0)

    # Layer 2: Linear(512, 256) + ReLU
    h2 = jnp.dot(h1.astype(jnp.bfloat16), w2_ref[...],
                 preferred_element_type=jnp.float32)
    h2 = jnp.maximum(h2 + b2_ref[...], 0.0)

    # Layer 3: Linear(256, out_dim), no activation.
    if w3_ref.shape[0] == 1:
        # out_dim == 1: w3 arrives as a (1, 256) row vector.  Use a VPU
        # multiply + lane reduction instead of an N=1 MXU matmul.
        w3_row = w3_ref[...].astype(jnp.float32)                 # (1, 256)
        out = jnp.sum(h2 * w3_row, axis=-1, keepdims=True)       # (tm, 1)
    else:
        out = jnp.dot(h2.astype(jnp.bfloat16), w3_ref[...],
                      preferred_element_type=jnp.float32)
    o_ref[...] = (out + b3_ref[...]).astype(o_ref.dtype)


@jax.jit
def critic_forward(obs, params):
    obs = obs.astype(jnp.float32)
    B, in_dim = obs.shape
    out_dim = params["b3"].shape[1]

    # Batch tile: multiple of 8 (sublane), capped at TM_MAX; pad B so the
    # grid divides evenly (padded rows are dropped at the end).
    tm = min(TM_MAX, _round_up(B, 8))
    Bp = _round_up(B, tm)
    if Bp != B:
        obs = jnp.pad(obs, ((0, Bp - B), (0, 0)))

    # For out_dim == 1 present w3 as a (1, 256) row so the kernel uses the
    # VPU/XLU path; otherwise keep the (256, out_dim) MXU layout.
    w3 = params["w3"].T if out_dim == 1 else params["w3"]

    const = lambda i: (0, 0)  # weights/biases stay resident across grid steps
    out = pl.pallas_call(
        critic_mlp_kernel,
        out_shape=jax.ShapeDtypeStruct((Bp, out_dim), jnp.float32),
        grid=(Bp // tm,),
        in_specs=[
            pl.BlockSpec((tm, in_dim), lambda i: (i, 0)),   # obs tile (streamed)
            pl.BlockSpec(params["w1"].shape, const),
            pl.BlockSpec(params["b1"].shape, const),
            pl.BlockSpec(params["w2"].shape, const),
            pl.BlockSpec(params["b2"].shape, const),
            pl.BlockSpec(w3.shape, const),
            pl.BlockSpec(params["b3"].shape, const),
        ],
        out_specs=pl.BlockSpec((tm, out_dim), lambda i: (i, 0)),
        compiler_params=pltpu.CompilerParams(
            dimension_semantics=("parallel",)),
    )(obs, params["w1"], params["b1"], params["w2"], params["b2"],
      w3, params["b3"])

    return out[:B]


# Pure-JAX reference mirroring the kernel math (bf16 weights, f32 accumulate).
def critic_forward_ref(obs, params):
    x = obs.astype(jnp.float32).astype(jnp.bfloat16)
    h1 = jnp.maximum(
        jnp.dot(x, params["w1"], preferred_element_type=jnp.float32)
        + params["b1"], 0.0)
    h2 = jnp.maximum(
        jnp.dot(h1.astype(jnp.bfloat16), params["w2"],
                preferred_element_type=jnp.float32) + params["b2"], 0.0)
    out_dim = params["b3"].shape[1]
    if out_dim == 1:
        out = jnp.sum(h2 * params["w3"].T.astype(jnp.float32),
                      axis=-1, keepdims=True)
    else:
        out = jnp.dot(h2.astype(jnp.bfloat16), params["w3"],
                      preferred_element_type=jnp.float32)
    return out + params["b3"]


if __name__ == "__main__":
    key = jax.random.PRNGKey(0)
    k_param, k_obs = jax.random.split(key)

    in_dim, out_dim, batch = 32, 1, 8
    params = make_params(k_param, in_dim, out_dim)
    obs = jax.random.normal(k_obs, (batch, in_dim), dtype=jnp.float32)

    out = critic_forward(obs, params)
    jax.block_until_ready(out)

    ref = critic_forward_ref(obs, params)
    assert out.shape == (batch, out_dim)
    assert jnp.allclose(out, ref, atol=1e-3, rtol=1e-3), (
        f"max abs err {jnp.max(jnp.abs(out - ref))}")

    print("KERNEL_OK")
</pallas_src>

<mosaic_0001>
module attributes {stable_mosaic.version = 11 : i64} {
  func.func @critic_mlp_kernel(%arg0: i32, %arg1: memref<8x32xf32, #tpu.memory_space<vmem>>, %arg2: memref<32x512xbf16, #tpu.memory_space<vmem>>, %arg3: memref<1x512xf32, #tpu.memory_space<vmem>>, %arg4: memref<512x256xbf16, #tpu.memory_space<vmem>>, %arg5: memref<1x256xf32, #tpu.memory_space<vmem>>, %arg6: memref<1x256xbf16, #tpu.memory_space<vmem>>, %arg7: memref<1x1xf32, #tpu.memory_space<vmem>>, %arg8: memref<8x1xf32, #tpu.memory_space<vmem>>) attributes {dimension_semantics = [#tpu.dimension_semantics<parallel>], iteration_bounds = array<i64: 1>, scalar_prefetch = 0 : i64, scratch_operands = 0 : i64, tpu.core_type = #tpu.core_type<tc>, window_params = [{transform_indices = @transform_0, window_bounds = array<i64: 8, 32>}, {pipeline_mode = #tpu.pipeline_mode<synchronous>, transform_indices = @transform_1, window_bounds = array<i64: 32, 512>}, {pipeline_mode = #tpu.pipeline_mode<synchronous>, transform_indices = @transform_2, window_bounds = array<i64: 1, 512>}, {pipeline_mode = #tpu.pipeline_mode<synchronous>, transform_indices = @transform_3, window_bounds = array<i64: 512, 256>}, {pipeline_mode = #tpu.pipeline_mode<synchronous>, transform_indices = @transform_4, window_bounds = array<i64: 1, 256>}, {pipeline_mode = #tpu.pipeline_mode<synchronous>, transform_indices = @transform_5, window_bounds = array<i64: 1, 256>}, {pipeline_mode = #tpu.pipeline_mode<synchronous>, transform_indices = @transform_6, window_bounds = array<i64: 1, 1>}, {transform_indices = @transform_7, window_bounds = array<i64: 8, 1>}]} {
    %c0 = arith.constant 0 : index
    %c0_0 = arith.constant 0 : index
    %0 = vector.load %arg1[%c0, %c0_0] : memref<8x32xf32, #tpu.memory_space<vmem>>, vector<8x32xf32>
    %1 = arith.truncf %0 : vector<8x32xf32> to vector<8x32xbf16>
    %c0_1 = arith.constant 0 : index
    %c0_2 = arith.constant 0 : index
    %2 = vector.load %arg2[%c0_1, %c0_2] : memref<32x512xbf16, #tpu.memory_space<vmem>>, vector<32x512xbf16>
    %cst = arith.constant dense<0.000000e+00> : vector<8x512xf32>
    %3 = tpu.matmul %1, %2, %cst {dimension_numbers = #tpu.dot_dimension_numbers<[1], [0], [0], [1], [0, 0, 1, 1], [], []>} : vector<8x32xbf16>, vector<32x512xbf16>, vector<8x512xf32> -> vector<8x512xf32>
    %c0_3 = arith.constant 0 : index
    %c0_4 = arith.constant 0 : index
    %4 = vector.load %arg3[%c0_3, %c0_4] : memref<1x512xf32, #tpu.memory_space<vmem>>, vector<1x512xf32>
    %5 = vector.broadcast %4 : vector<1x512xf32> to vector<8x512xf32>
    %6 = arith.addf %3, %5 : vector<8x512xf32>
    %cst_5 = arith.constant 0.000000e+00 : f32
    %7 = vector.broadcast %cst_5 : f32 to vector<8x512xf32>
    %8 = arith.maximumf %6, %7 : vector<8x512xf32>
    %9 = arith.truncf %8 : vector<8x512xf32> to vector<8x512xbf16>
    %c0_6 = arith.constant 0 : index
    %c0_7 = arith.constant 0 : index
    %10 = vector.load %arg4[%c0_6, %c0_7] : memref<512x256xbf16, #tpu.memory_space<vmem>>, vector<512x256xbf16>
    %cst_8 = arith.constant dense<0.000000e+00> : vector<8x256xf32>
    %11 = tpu.matmul %9, %10, %cst_8 {dimension_numbers = #tpu.dot_dimension_numbers<[1], [0], [0], [1], [0, 0, 1, 1], [], []>} : vector<8x512xbf16>, vector<512x256xbf16>, vector<8x256xf32> -> vector<8x256xf32>
    %c0_9 = arith.constant 0 : index
    %c0_10 = arith.constant 0 : index
    %12 = vector.load %arg5[%c0_9, %c0_10] : memref<1x256xf32, #tpu.memory_space<vmem>>, vector<1x256xf32>
    %13 = vector.broadcast %12 : vector<1x256xf32> to vector<8x256xf32>
    %14 = arith.addf %11, %13 : vector<8x256xf32>
    %cst_11 = arith.constant 0.000000e+00 : f32
    %15 = vector.broadcast %cst_11 : f32 to vector<8x256xf32>
    %16 = arith.maximumf %14, %15 : vector<8x256xf32>
    %c0_12 = arith.constant 0 : index
    %c0_13 = arith.constant 0 : index
    %17 = vector.load %arg6[%c0_12, %c0_13] : memref<1x256xbf16, #tpu.memory_space<vmem>>, vector<1x256xbf16>
    %18 = arith.extf %17 : vector<1x256xbf16> to vector<1x256xf32>
    %19 = vector.broadcast %18 : vector<1x256xf32> to vector<8x256xf32>
    %20 = arith.mulf %16, %19 : vector<8x256xf32>
    %cst_14 = arith.constant dense<0.000000e+00> : vector<8xf32>
    %21 = vector.multi_reduction <add>, %20, %cst_14 [1] : vector<8x256xf32> to vector<8xf32>
    %22 = vector.shape_cast %21 : vector<8xf32> to vector<8x1xf32>
    %c0_15 = arith.constant 0 : index
    %c0_16 = arith.constant 0 : index
    %23 = vector.load %arg7[%c0_15, %c0_16] : memref<1x1xf32, #tpu.memory_space<vmem>>, vector<1x1xf32>
    %24 = vector.broadcast %23 : vector<1x1xf32> to vector<8x1xf32>
    %25 = arith.addf %22, %24 : vector<8x1xf32>
    %c0_17 = arith.constant 0 : index
    %c0_18 = arith.constant 0 : index
    %26 = vector.load %arg8[%c0_17, %c0_18] : memref<8x1xf32, #tpu.memory_space<vmem>>, vector<8x1xf32>
    tpu.vector_store %arg8[%c0_17, %c0_18], %25 {strides = array<i32>} : memref<8x1xf32, #tpu.memory_space<vmem>>, vector<8x1xf32>,
    return
  }
  func.func @transform_0(%arg0: i32) -> (i32, i32) {
    %c0_i32 = arith.constant 0 : i32
    %c0_i32_0 = arith.constant 0 : i32
    return %arg0, %c0_i32 : i32, i32
  }
  func.func @transform_1(%arg0: i32) -> (i32, i32) {
    %c0_i32 = arith.constant 0 : i32
    %c0_i32_0 = arith.constant 0 : i32
    %c0_i32_1 = arith.constant 0 : i32
    return %c0_i32, %c0_i32_0 : i32, i32
  }
  func.func @transform_2(%arg0: i32) -> (i32, i32) {
    %c0_i32 = arith.constant 0 : i32
    %c0_i32_0 = arith.constant 0 : i32
    %c0_i32_1 = arith.constant 0 : i32
    return %c0_i32, %c0_i32_0 : i32, i32
  }
  func.func @transform_3(%arg0: i32) -> (i32, i32) {
    %c0_i32 = arith.constant 0 : i32
    %c0_i32_0 = arith.constant 0 : i32
    %c0_i32_1 = arith.constant 0 : i32
    return %c0_i32, %c0_i32_0 : i32, i32
  }
  func.func @transform_4(%arg0: i32) -> (i32, i32) {
    %c0_i32 = arith.constant 0 : i32
    %c0_i32_0 = arith.constant 0 : i32
    %c0_i32_1 = arith.constant 0 : i32
    return %c0_i32, %c0_i32_0 : i32, i32
  }
  func.func @transform_5(%arg0: i32) -> (i32, i32) {
    %c0_i32 = arith.constant 0 : i32
    %c0_i32_0 = arith.constant 0 : i32
    %c0_i32_1 = arith.constant 0 : i32
    return %c0_i32, %c0_i32_0 : i32, i32
  }
  func.func @transform_6(%arg0: i32) -> (i32, i32) {
    %c0_i32 = arith.constant 0 : i32
    %c0_i32_0 = arith.constant 0 : i32
    %c0_i32_1 = arith.constant 0 : i32
    return %c0_i32, %c0_i32_0 : i32, i32
  }
  func.func @transform_7(%arg0: i32) -> (i32, i32) {
    %c0_i32 = arith.constant 0 : i32
    %c0_i32_0 = arith.constant 0 : i32
    return %arg0, %c0_i32 : i32, i32
  }
}

</mosaic_0001>

<bundles_post_ra>
// kernel: critic_forward.1
= control target key start
LH: loop header
LB: loop body
LE: loop exit
PB: predicated region body
PF: predicated region fallthrough
CT: control target
= control target key end

     0   :  { %s1120_s0 = inlined_call_operand.hbm [shape: f32[8,32], index: 0, kind: input, shape index: {}]   ;;  %s1121_s1 = inlined_call_operand.hbm [shape: bf16[32,512], index: 1, kind: input, shape index: {}]   ;;  %s1122_s2 = inlined_call_operand.vmem [shape: f32[1,512], index: 2, kind: input, shape index: {}]   ;;  %s1123_s3 = inlined_call_operand.hbm [shape: bf16[512,256], index: 3, kind: input, shape index: {}]   ;;  %s1124_s4 = inlined_call_operand.vmem [shape: f32[1,256], index: 4, kind: input, shape index: {}]   ;;  %s1125_s5 = inlined_call_operand.vmem [shape: bf16[1,256], index: 5, kind: input, shape index: {}]   ;;  %s1126_s6 = inlined_call_operand.<no memory space> [shape: f32[1,1], index: 6, kind: input, shape index: {}]   ;;  %s1127_s7 = inlined_call_operand.vmem [shape: f32[8,1], index: 7, kind: output, shape index: {}]  }
   0x1   :  { %v12_v0 = vstv %s1126_s6 }
   0x2   :  { %13 = vst [vmem:[#allocation2] sm:$0x1] %v12_v0 }
   0x3   :  { %14 = vsyncpa [#allocation4], 0 }
   0x4   :  { %15 = vsyncpa [#allocation6], 0  ;;  %s1021_s26 = smov [#allocation5]   ;;  %s951_s30 = scalar_lea.hbm %s1121_s1, 1024 }
   0x5   :  { %s31_s27 = sshll.u32 %s1021_s26, 4  ;;  %p952_p0 = scmp.ne.s32.totalorder %s1121_s1, %s951_s30  ;;  %s32_s27 = int_to_ptr.vmem [resolvable:$true] %s31_s27 }
   0x6   :  { %p955_p1 = scmp.lt.u32.totalorder %s951_s30, %s1121_s1 }
   0x8   :  { %p957_p2 = pnand %p955_p1, %p952_p0 }
   0xa   :  { %960 = shalt.err (!%p957_p2)
}
   0xb   :  { %s961_s6 = scalar_lea.vmem %s32_s27, 1024  ;;  %p966_p4 = scmp.lt.s32.totalorder %s32_s27, %s32_s27 }
   0xc   :  { %p962_p3 = scmp.ne.s32.totalorder %s32_s27, %s961_s6  ;;  %p967_p5 = scmp.lt.s32.totalorder %s961_s6, %s961_s6 }
   0xe   :  { %p968_p6 = por %p967_p5, %p966_p4 }
  0x10   :  { %p969_p7 = pnand %p968_p6, %p962_p3 }
  0x12   :  { %972 = shalt.err (!%p969_p7)
}
  0x13   :  { %s1022_s12 = smov 256   ;;  %s1023_s13 = smov 16  }
  0x14   :  { %37 = dma.hbm_to_vmem [thread:$0]  %s1121_s1, 1024, %s32_s27, [#allocation6], %s1022_s12, %s1022_s12, %s1023_s13  }
  0x15   :  { %s1024_s16 = smov [#allocation3]   ;;  %s1025_s18 = smov [#allocation7]  }
  0x16   :  { %s22_s17 = sshll.u32 %s1024_s16, 4  ;;  %s45_s19 = sshll.u32 %s1025_s18, 4  ;;  %s23_s17 = int_to_ptr.vmem [resolvable:$true] %s22_s17  ;;  %s46_s19 = int_to_ptr.vmem [resolvable:$true] %s45_s19 }
  0x17   :  { %s973_s22 = scalar_lea.hbm %s1120_s0, 128 }
  0x18   :  { %p974_p8 = scmp.ne.s32.totalorder %s1120_s0, %s973_s22  ;;  %p977_p9 = scmp.lt.u32.totalorder %s973_s22, %s1120_s0 }
  0x1a   :  { %p979_p10 = pnand %p977_p9, %p974_p8 }
  0x1c   :  { %982 = shalt.err (!%p979_p10)
}
  0x1d   :  { %s983_s1 = scalar_lea.vmem %s23_s17, 128  ;;  %p988_p12 = scmp.lt.s32.totalorder %s23_s17, %s23_s17 }
  0x1e   :  { %p984_p11 = scmp.ne.s32.totalorder %s23_s17, %s983_s1  ;;  %p989_p13 = scmp.lt.s32.totalorder %s983_s1, %s983_s1 }
  0x20   :  { %p990_p0 = por %p989_p13, %p988_p12 }
  0x22   :  { %p991_p1 = pnand %p990_p0, %p984_p11 }
  0x24   :  { %994 = shalt.err (!%p991_p1)
}
  0x25   :  { %25 = dma.hbm_to_vmem [thread:$0]  %s1120_s0, 128, %s23_s17, [#allocation4]  }
  0x26   :  { %s995_s8 = scalar_lea.hbm %s1123_s3, 8192 }
  0x27   :  { %p996_p2 = scmp.ne.s32.totalorder %s1123_s3, %s995_s8  ;;  %p999_p3 = scmp.lt.u32.totalorder %s995_s8, %s1123_s3 }
  0x29   :  { %p1001_p4 = pnand %p999_p3, %p996_p2 }
  0x2b   :  { %1004 = shalt.err (!%p1001_p4)
}
  0x2c   :  { %s1005_s12 = scalar_lea.vmem %s46_s19, 8192  ;;  %p1010_p6 = scmp.lt.s32.totalorder %s46_s19, %s46_s19 }
  0x2d   :  { %p1006_p5 = scmp.ne.s32.totalorder %s46_s19, %s1005_s12  ;;  %p1011_p7 = scmp.lt.s32.totalorder %s1005_s12, %s1005_s12 }
  0x2f   :  { %p1012_p8 = por %p1011_p7, %p1010_p6 }
  0x31   :  { %p1013_p9 = pnand %p1012_p8, %p1006_p5 }
  0x33   :  { %1016 = shalt.err (!%p1013_p9)
}
  0x34   :  { %s1026_s0 = smov 128   ;;  %s1027_s13 = smov 8  }
  0x35   :  { %51 = dma.hbm_to_vmem [thread:$0]  %s1123_s3, 8192, %s46_s19, [#allocation6], %s1026_s0, %s1026_s0, %s1027_s13  }
  0x36   :  { %1017 = dma.done.wait [#allocation4], 128  }
  0x37   :  { %1018 = vsyncadd [#allocation4], 4294967168 }
  0x38   :  { %1019 = dma.done.wait [#allocation6], 9216  }
  0x39   :  { %1020 = vsyncadd [#allocation6], 4294958080  ;;  %v1028_v1 = vmov 0   ;;  %v843_v2 = vld [vmem:[#allocation5 + $0x4] ss:$16 sps:$4 sm:$0xff]   ;;  %v68_v10 = vld [vmem:[#allocation3] sm:$0xff] }
  0x3a   :  { %176 = vmatprep.mubr.bf16.mxu0 %v1028_v1  ;;  %217 = vmatprep.mubr.bf16.mxu1 %v1028_v1  ;;  %v845_v3 = vld [vmem:[#allocation5 + $0xc] ss:$16 sps:$4 sm:$0xff]   ;;  %v847_v4 = vld [vmem:[#allocation5] ss:$16 sps:$4 sm:$0xff]   ;;  %v848_v5 = vld [vmem:[#allocation5 + $0x8] ss:$16 sps:$4 sm:$0xff]   ;;  %v69_v13 = vpack.c.bf16 %v68_v10, %v68_v10 }
  0x3b   :  { %144 = vmatprep.subr.bf16.mxu0 %v843_v2  ;;  %185 = vmatprep.subr.bf16.mxu1 %v845_v3  ;;  %v849_v6 = vld [vmem:[#allocation5 + $0x24] ss:$16 sps:$4 sm:$0xff]   ;;  %v851_v7 = vld [vmem:[#allocation5 + $0x2c] ss:$16 sps:$4 sm:$0xff]   ;;  %v853_v8 = vld [vmem:[#allocation5 + $0x20] ss:$16 sps:$4 sm:$0xff]  }
  0x3c   :  { %145 = vmatpush1.bf16.msra.mxu0 %v847_v4  ;;  %186 = vmatpush1.bf16.msra.mxu1 %v848_v5  ;;  %v854_v9 = vld [vmem:[#allocation5 + $0x28] ss:$16 sps:$4 sm:$0xff]   ;;  %v857_v12 = vld [vmem:[#allocation7 + $0x4] ss:$8 sps:$4 sm:$0xff]   ;;  %vm140_vm0 = vcmask 261120   ;;  %vm748_vm1 = vcmask 7168  }
  0x3d   :  { %146 = vmatprep.subr.bf16.mxu0 %v849_v6  ;;  %187 = vmatprep.subr.bf16.mxu1 %v851_v7  ;;  %v855_v11 = vld [vmem:[#allocation7] ss:$8 sps:$4 sm:$0xff]   ;;  %v860_v15 = vld [vmem:[#allocation7 + $0x104] ss:$8 sps:$4 sm:$0xff]   ;;  %v863_v16 = vld [vmem:[#allocation7 + $0x14] ss:$8 sps:$4 sm:$0xff]  }
  0x3e   :  { %v858_v14 = vld [vmem:[#allocation7 + $0x100] ss:$8 sps:$4 sm:$0xff]   ;;  %v866_v17 = vld [vmem:[#allocation7 + $0x114] ss:$8 sps:$4 sm:$0xff]   ;;  %v861_v18 = vld [vmem:[#allocation7 + $0x10] ss:$8 sps:$4 sm:$0xff]  }
  0x3f   :  { %v864_v19 = vld [vmem:[#allocation7 + $0x110] ss:$8 sps:$4 sm:$0xff]   ;;  %v869_v20 = vld [vmem:[#allocation7 + $0x24] ss:$8 sps:$4 sm:$0xff]   ;;  %v867_v22 = vld [vmem:[#allocation7 + $0x20] ss:$8 sps:$4 sm:$0xff]  }
  0x40   :  { %147 = vmatpush1.bf16.msra.mxu0 %v853_v8  ;;  %188 = vmatpush1.bf16.msra.mxu1 %v854_v9  ;;  %v872_v21 = vld [vmem:[#allocation7 + $0x124] ss:$8 sps:$4 sm:$0xff]   ;;  %v870_v23 = vld [vmem:[#allocation7 + $0x120] ss:$8 sps:$4 sm:$0xff]   ;;  %v875_v24 = vld [vmem:[#allocation7 + $0x34] ss:$8 sps:$4 sm:$0xff]  }
  0x41   :  { %630 = vmatprep.subr.bf16.mxu1 %v857_v12  ;;  %671 = vmatprep.subr.bf16.mxu0 %v860_v15  ;;  %v878_v25 = vld [vmem:[#allocation7 + $0x134] ss:$8 sps:$4 sm:$0xff]   ;;  %v873_v26 = vld [vmem:[#allocation7 + $0x30] ss:$8 sps:$4 sm:$0xff]   ;;  %v881_v28 = vld [vmem:[#allocation7 + $0x44] ss:$8 sps:$4 sm:$0xff]   ;;  %v80_v12 = vlaneseq }
  0x42   :  { %v876_v27 = vld [vmem:[#allocation7 + $0x130] ss:$8 sps:$4 sm:$0xff]   ;;  %v884_v29 = vld [vmem:[#allocation7 + $0x144] ss:$8 sps:$4 sm:$0xff]   ;;  %v879_v30 = vld [vmem:[#allocation7 + $0x40] ss:$8 sps:$4 sm:$0xff]  }
  0x43   :  { %764 = vmatmul.mubr.msk.bf16.vlgmr.msra.gmra.mrb[0].mxu0 %vm140_vm0, %v69_v13  ;;  %765 = vmatmul.mubr.msk.bf16.vlgmr.msra.gmra.mrb[0].mxu1 %vm140_vm0, %v69_v13  ;;  %v882_v31 = vld [vmem:[#allocation7 + $0x140] ss:$8 sps:$4 sm:$0xff]   ;;  %v887_v32 = vld [vmem:[#allocation7 + $0x54] ss:$8 sps:$4 sm:$0xff]   ;;  %v885_v34 = vld [vmem:[#allocation7 + $0x50] ss:$8 sps:$4 sm:$0xff]  }
  0x44   :  { %631 = vmatpush1.bf16.msra.mxu1 %v855_v11  ;;  %672 = vmatpush1.bf16.msra.mxu0 %v858_v14  ;;  %v890_v33 = vld [vmem:[#allocation7 + $0x154] ss:$8 sps:$4 sm:$0xff]   ;;  %v888_v35 = vld [vmem:[#allocation7 + $0x150] ss:$8 sps:$4 sm:$0xff]   ;;  %v893_v36 = vld [vmem:[#allocation7 + $0x64] ss:$8 sps:$4 sm:$0xff]  }
  0x45   :  { %632 = vmatprep.subr.bf16.mxu1 %v863_v16  ;;  %673 = vmatprep.subr.bf16.mxu0 %v866_v17  ;;  %v896_v37 = vld [vmem:[#allocation7 + $0x164] ss:$8 sps:$4 sm:$0xff]   ;;  %v891_v38 = vld [vmem:[#allocation7 + $0x60] ss:$8 sps:$4 sm:$0xff]   ;;  %v899_v40 = vld [vmem:[#allocation7 + $0x74] ss:$8 sps:$4 sm:$0xff]  }
  0x46   :  { %v894_v39 = vld [vmem:[#allocation7 + $0x160] ss:$8 sps:$4 sm:$0xff]   ;;  %v902_v41 = vld [vmem:[#allocation7 + $0x174] ss:$8 sps:$4 sm:$0xff]   ;;  %v897_v42 = vld [vmem:[#allocation7 + $0x70] ss:$8 sps:$4 sm:$0xff]  }
  0x47   :  { %v900_v43 = vld [vmem:[#allocation7 + $0x170] ss:$8 sps:$4 sm:$0xff]   ;;  %v905_v44 = vld [vmem:[#allocation7 + $0x84] ss:$8 sps:$4 sm:$0xff]   ;;  %v903_v46 = vld [vmem:[#allocation7 + $0x80] ss:$8 sps:$4 sm:$0xff]  }
  0x48   :  { %633 = vmatpush1.bf16.msra.mxu1 %v861_v18  ;;  %674 = vmatpush1.bf16.msra.mxu0 %v864_v19  ;;  %v908_v45 = vld [vmem:[#allocation7 + $0x184] ss:$8 sps:$4 sm:$0xff]   ;;  %v906_v47 = vld [vmem:[#allocation7 + $0x180] ss:$8 sps:$4 sm:$0xff]   ;;  %v911_v48 = vld [vmem:[#allocation7 + $0x94] ss:$8 sps:$4 sm:$0xff]  }
  0x49   :  { %634 = vmatprep.subr.bf16.mxu1 %v869_v20  ;;  %675 = vmatprep.subr.bf16.mxu0 %v872_v21  ;;  %v914_v49 = vld [vmem:[#allocation7 + $0x194] ss:$8 sps:$4 sm:$0xff]   ;;  %v909_v50 = vld [vmem:[#allocation7 + $0x90] ss:$8 sps:$4 sm:$0xff]   ;;  %v917_v52 = vld [vmem:[#allocation7 + $0xa4] ss:$8 sps:$4 sm:$0xff]  }
  0x4a   :  { %v912_v51 = vld [vmem:[#allocation7 + $0x190] ss:$8 sps:$4 sm:$0xff]   ;;  %v920_v53 = vld [vmem:[#allocation7 + $0x1a4] ss:$8 sps:$4 sm:$0xff]   ;;  %v915_v54 = vld [vmem:[#allocation7 + $0xa0] ss:$8 sps:$4 sm:$0xff]  }
  0x4b   :  { %v918_v55 = vld [vmem:[#allocation7 + $0x1a0] ss:$8 sps:$4 sm:$0xff]   ;;  %v923_v56 = vld [vmem:[#allocation7 + $0xb4] ss:$8 sps:$4 sm:$0xff]   ;;  %v921_v58 = vld [vmem:[#allocation7 + $0xb0] ss:$8 sps:$4 sm:$0xff]  }
  0x4c   :  { %635 = vmatpush1.bf16.msra.mxu1 %v867_v22  ;;  %676 = vmatpush1.bf16.msra.mxu0 %v870_v23  ;;  %v926_v57 = vld [vmem:[#allocation7 + $0x1b4] ss:$8 sps:$4 sm:$0xff]   ;;  %v924_v59 = vld [vmem:[#allocation7 + $0x1b0] ss:$8 sps:$4 sm:$0xff]   ;;  %v929_v60 = vld [vmem:[#allocation7 + $0xc4] ss:$8 sps:$4 sm:$0xff]  }
  0x4d   :  { %636 = vmatprep.subr.bf16.mxu1 %v875_v24  ;;  %677 = vmatprep.subr.bf16.mxu0 %v878_v25  ;;  %v932_v61 = vld [vmem:[#allocation7 + $0x1c4] ss:$8 sps:$4 sm:$0xff]   ;;  %v927_v62 = vld [vmem:[#allocation7 + $0xc0] ss:$8 sps:$4 sm:$0xff]   ;;  %v935_v0 = vld [vmem:[#allocation7 + $0xd4] ss:$8 sps:$4 sm:$0xff]  }
  0x4e   :  { %v930_v63 = vld [vmem:[#allocation7 + $0x1c0] ss:$8 sps:$4 sm:$0xff]   ;;  %v938_v1 = vld [vmem:[#allocation7 + $0x1d4] ss:$8 sps:$4 sm:$0xff]   ;;  %v933_v2 = vld [vmem:[#allocation7 + $0xd0] ss:$8 sps:$4 sm:$0xff]  }
  0x4f   :  { %v936_v3 = vld [vmem:[#allocation7 + $0x1d0] ss:$8 sps:$4 sm:$0xff]   ;;  %v941_v4 = vld [vmem:[#allocation7 + $0xe4] ss:$8 sps:$4 sm:$0xff]   ;;  %v939_v6 = vld [vmem:[#allocation7 + $0xe0] ss:$8 sps:$4 sm:$0xff]  }
  0x50   :  { %637 = vmatpush1.bf16.msra.mxu1 %v873_v26  ;;  %678 = vmatpush1.bf16.msra.mxu0 %v876_v27  ;;  %v944_v5 = vld [vmem:[#allocation7 + $0x1e4] ss:$8 sps:$4 sm:$0xff]   ;;  %v942_v7 = vld [vmem:[#allocation7 + $0x1e0] ss:$8 sps:$4 sm:$0xff]   ;;  %v947_v8 = vld [vmem:[#allocation7 + $0xf4] ss:$8 sps:$4 sm:$0xff]  }
  0x51   :  { %638 = vmatprep.subr.bf16.mxu1 %v881_v28  ;;  %679 = vmatprep.subr.bf16.mxu0 %v884_v29  ;;  %v950_v9 = vld [vmem:[#allocation7 + $0x1f4] ss:$8 sps:$4 sm:$0xff]   ;;  %v945_v10 = vld [vmem:[#allocation7 + $0xf0] ss:$8 sps:$4 sm:$0xff]   ;;  %v81_v13 = vshrl.u32 %v80_v12, 7 }
  0x52   :  { %v948_v11 = vld [vmem:[#allocation7 + $0x1f0] ss:$8 sps:$4 sm:$0xff]  }
  0x53   :  { %v82_v14 = vsub.s32 0, %v81_v13  ;;  %v90_v15 = vsub.s32 2, %v81_v13  ;;  %v78_v16 = vld [vmem:[%s1122_s2] sm:$0xf]  ;;  %v86_v17 = vsub.s32 1, %v81_v13  ;;  %v94_v18 = vsub.s32 3, %v81_v13 }
  0x54   :  { %639 = vmatpush1.bf16.msra.mxu1 %v879_v30  ;;  %680 = vmatpush1.bf16.msra.mxu0 %v882_v31 }
  0x55   :  { %640 = vmatprep.subr.bf16.mxu1 %v887_v32  ;;  %681 = vmatprep.subr.bf16.mxu0 %v890_v33  ;;  %v83_v19 = vrot.slane %v78_v16, %v82_v14  ;;  %v91_v20 = vrot.slane %v78_v16, %v90_v15  ;;  %v87_v21 = vrot.slane %v78_v16, %v86_v17 }
  0x56   :  { %v95_v22 = vrot.slane %v78_v16, %v94_v18 }
  0x58   :  { %641 = vmatpush1.bf16.msra.mxu1 %v885_v34  ;;  %682 = vmatpush1.bf16.msra.mxu0 %v888_v35 }
  0x59   :  { %642 = vmatprep.subr.bf16.mxu1 %v893_v36  ;;  %683 = vmatprep.subr.bf16.mxu0 %v896_v37 }
  0x5c   :  { %643 = vmatpush1.bf16.msra.mxu1 %v891_v38  ;;  %684 = vmatpush1.bf16.msra.mxu0 %v894_v39 }
  0x5d   :  { %644 = vmatprep.subr.bf16.mxu1 %v899_v40  ;;  %685 = vmatprep.subr.bf16.mxu0 %v902_v41 }
  0x60   :  { %645 = vmatpush1.bf16.msra.mxu1 %v897_v42  ;;  %686 = vmatpush1.bf16.msra.mxu0 %v900_v43  ;;  %v714_v43 = vld [vmem:[%s1125_s5] sm:$0x3] }
  0x61   :  { %646 = vmatprep.subr.bf16.mxu1 %v905_v44  ;;  %687 = vmatprep.subr.bf16.mxu0 %v908_v45  ;;  %v298_v44 = vld [vmem:[%s1124_s4] sm:$0x3]  ;;  %v715_v45 = vunpack.c.l.bf16 %v714_v43 }
  0x64   :  { %647 = vmatpush1.bf16.msra.mxu1 %v903_v46  ;;  %688 = vmatpush1.bf16.msra.mxu0 %v906_v47  ;;  %v303_v46 = vrot.slane %v298_v44, %v82_v14  ;;  %v307_v47 = vrot.slane %v298_v44, %v86_v17 }
  0x65   :  { %648 = vmatprep.subr.bf16.mxu1 %v911_v48  ;;  %689 = vmatprep.subr.bf16.mxu0 %v914_v49  ;;  %v720_v48 = vrot.slane %v715_v45, %v82_v14 }
  0x68   :  { %649 = vmatpush1.bf16.msra.mxu1 %v909_v50  ;;  %690 = vmatpush1.bf16.msra.mxu0 %v912_v51  ;;  %v724_v51 = vrot.slane %v715_v45, %v90_v15 }
  0x69   :  { %650 = vmatprep.subr.bf16.mxu1 %v917_v52  ;;  %691 = vmatprep.subr.bf16.mxu0 %v920_v53 }
  0x6c   :  { %651 = vmatpush1.bf16.msra.mxu1 %v915_v54  ;;  %692 = vmatpush1.bf16.msra.mxu0 %v918_v55 }
  0x6d   :  { %652 = vmatprep.subr.bf16.mxu1 %v923_v56  ;;  %693 = vmatprep.subr.bf16.mxu0 %v926_v57 }
  0x70   :  { %653 = vmatpush1.bf16.msra.mxu1 %v921_v58  ;;  %694 = vmatpush1.bf16.msra.mxu0 %v924_v59 }
  0x71   :  { %654 = vmatprep.subr.bf16.mxu1 %v929_v60  ;;  %695 = vmatprep.subr.bf16.mxu0 %v932_v61  ;;  %v730_v61 = vrot.slane %v720_v48, %v82_v14 }
  0x74   :  { %655 = vmatpush1.bf16.msra.mxu1 %v927_v62  ;;  %696 = vmatpush1.bf16.msra.mxu0 %v930_v63  ;;  %v734_v63 = vrot.slane %v724_v51, %v82_v14 }
  0x75   :  { %656 = vmatprep.subr.bf16.mxu1 %v935_v0  ;;  %697 = vmatprep.subr.bf16.mxu0 %v938_v1 }
  0x78   :  { %657 = vmatpush1.bf16.msra.mxu1 %v933_v2  ;;  %698 = vmatpush1.bf16.msra.mxu0 %v936_v3 }
  0x79   :  { %658 = vmatprep.subr.bf16.mxu1 %v941_v4  ;;  %699 = vmatprep.subr.bf16.mxu0 %v944_v5  ;;  %v830_v5 = vld [vmem:[#allocation2] ss:$0 sm:$0xff] }
  0x7c   :  { %659 = vmatpush1.bf16.msra.mxu1 %v939_v6  ;;  %700 = vmatpush1.bf16.msra.mxu0 %v942_v7 }
  0x7d   :  { %660 = vmatprep.subr.bf16.mxu1 %v947_v8  ;;  %701 = vmatprep.subr.bf16.mxu0 %v950_v9 }
  0x80   :  { %661 = vmatpush1.bf16.msra.mxu1 %v945_v10  ;;  %702 = vmatpush1.bf16.msra.mxu0 %v948_v11 }
 0x116   :  { %v178_v23 = vpop.f32.mrb[0].mxu0  ;;  %v219_v24 = vpop.f32.mrb[0].mxu1 }
 0x117   :  { %v179_v25 = vadd.f32 %v178_v23, %v83_v19  ;;  %v220_v26 = vadd.f32 %v219_v24, %v91_v20  ;;  %v180_v27 = vpop.f32.mrb[1].mxu0  ;;  %v221_v28 = vpop.f32.mrb[1].mxu1 }
 0x118   :  { %v181_v29 = vadd.f32 %v180_v27, %v87_v21  ;;  %v222_v30 = vadd.f32 %v221_v28, %v95_v22  ;;  %v182_v31 = vpop.f32.mrb[2].mxu0  ;;  %v223_v32 = vpop.f32.mrb[2].mxu1 }
 0x119   :  { %v226_v33 = vmax.f32 %v179_v25, 0.0  ;;  %v228_v34 = vmax.f32 %v220_v26, 0.0  ;;  %v183_v35 = vpop.f32.mrb[3].mxu0  ;;  %v224_v36 = vpop.f32.mrb[3].mxu1 }
 0x11a   :  { %v227_v37 = vmax.f32 %v181_v29, 0.0  ;;  %v229_v38 = vmax.f32 %v222_v30, 0.0 }
 0x11b   :  { %v232_v39 = vpack.c.bf16 %v228_v34, %v228_v34  ;;  %v230_v42 = vpack.c.bf16 %v226_v33, %v226_v33 }
 0x11c   :  { %v231_v40 = vpack.c.bf16 %v227_v37, %v227_v37  ;;  %v233_v41 = vpack.c.bf16 %v229_v38, %v229_v38 }
 0x11e   :  { %662 = vmatprep.mubr.bf16.mxu1 %v231_v40  ;;  %703 = vmatprep.mubr.bf16.mxu0 %v233_v41 }
 0x11f   :  { %663 = vmatmul.mubr.bf16.vlgmr.msra.gmra.mrb[4].mxu1 %v230_v42  ;;  %704 = vmatmul.mubr.bf16.vlgmr.msra.gmra.mrb[4].mxu0 %v232_v39 }
 0x1f2   :  { %v664_v49 = vpop.f32.mrb[4].mxu1  ;;  %v705_v50 = vpop.f32.mrb[4].mxu0 }
 0x1f3   :  { %v665_v52 = vadd.f32 %v664_v49, %v303_v46  ;;  %v666_v53 = vpop.f32.mrb[5].mxu1  ;;  %v707_v54 = vpop.f32.mrb[5].mxu0 }
 0x1f4   :  { %v667_v55 = vadd.f32 %v666_v53, %v307_v47  ;;  %v668_v56 = vpop.f32.mrb[6].mxu1  ;;  %v709_v57 = vpop.f32.mrb[6].mxu0 }
 0x1f5   :  { %v706_v58 = vadd.f32 %v705_v50, %v665_v52  ;;  %v669_v59 = vpop.f32.mrb[7].mxu1  ;;  %v710_v60 = vpop.f32.mrb[7].mxu0 }
 0x1f6   :  { %v708_v62 = vadd.f32 %v707_v54, %v667_v55 }
 0x1f7   :  { %v712_v0 = vmax.f32 %v706_v58, 0.0 }
 0x1f8   :  { %v713_v1 = vmax.f32 %v708_v62, 0.0 }
 0x1f9   :  { %v735_v2 = vmul.f32 %v730_v61, %v712_v0 }
 0x1fa   :  { %v736_v3 = vmul.f32 %v734_v63, %v713_v1 }
 0x1fc   :  { %v737_v4 = vadd.f32 %v736_v3, %v735_v2 }
 0x1fe   :  { %738 = vadd.xlane.f32.xlu0 %v737_v4 }
 0x28b   :  { %v739_v6 = vpop.xlane.xlu0 %738 }
 0x28c   :  { %v747_v7 = vadd.f32 %v830_v5, %v739_v6 }
 0x28e   :  { %749 = vst.msk [vmem:[%s1127_s7] sm:$0xff] %vm748_vm1, %v747_v7 }
 0x28f   :  { %754 = vsyncpa [#allocation4], 1 }
 0x290   :  { %755 = vsyncpa [#allocation6], 1 }

</bundles_post_ra>
